<compile_context>
chip_gen: v7x
topology: tpu7x:2x2x1
jax: 0.10.0
libtpu: 0.0.40
codegen_flags: <defaults>
</compile_context>

<pallas_src>
import functools
import math

import jax
import jax.numpy as jnp
from jax.experimental import pallas as pl
from jax.experimental.pallas import tpu as pltpu


def _gated_attention_kernel(x_ref, vu_ref, w_ref, out_ref, *,
                            n_inst, block_b, hidden_l):
    # x_ref  : [R, D]    bf16   (R = block_b * n_inst, flattened bag slab)
    # vu_ref : [D, 2L]   bf16   (pre-transposed, [V.T | U.T])
    # w_ref  : [1, L]    f32    (lane-dense attention vector)
    # out_ref: [block_b, D] f32
    d_feat = x_ref.shape[-1]

    x_mm = x_ref[...]                                              # bf16 [R, D]

    # Single fused MXU pass, f32 accumulation.
    g = jnp.dot(x_mm, vu_ref[...],
                preferred_element_type=jnp.float32)                # [R, 2L] f32
    h = jnp.tanh(g[:, :hidden_l]) * jax.nn.sigmoid(g[:, hidden_l:])  # [R, L]

    # Attention scores for all bags at once: VPU multiply against the
    # lane-dense W row + lane reduce (no lane-sparse [L,1] matmul).
    h3 = h.reshape(block_b, n_inst, hidden_l)                      # [bb, N, L]
    scores = jnp.sum(h3 * w_ref[...], axis=-1)                     # [bb, N]

    # Vectorized per-bag softmax over the instance axis (f32).
    m = jnp.max(scores, axis=-1, keepdims=True)                    # [bb, 1]
    e = jnp.exp(scores - m)                                        # [bb, N]
    den = jnp.sum(e, axis=-1, keepdims=True)                       # [bb, 1]
    wts = e * pl.reciprocal(den, approx=True)                      # [bb, N]

    # Weighted pooling, f32 accumulation, single full-tile store.
    x3 = x_mm.astype(jnp.float32).reshape(block_b, n_inst, d_feat)  # [bb, N, D]
    out_ref[...] = jnp.sum(x3 * wts[:, :, None], axis=1)            # [bb, D]


def _choose_block_b(B, N, D, L, *, target_rows=2048,
                    vmem_budget=40 * 1024 * 1024):
    """Bags per grid step: R = block_b*N large enough to amortize the ~0.35us
    per-step overhead and fill the MXU M dim, small enough for VMEM."""
    # Per flattened row: double-buffered bf16 x, f32 [2L] gate output,
    # f32 [L] h, f32 [D] x copy for pooling.
    bytes_per_row = 2 * D * 2 + (2 * L) * 4 + L * 4 + D * 4
    max_rows = max(N, vmem_budget // max(bytes_per_row, 1))
    rows = min(target_rows, max_rows)
    bb = max(1, min(B, rows // N))
    if bb < B:
        # Keep the output block sublane-aligned when it is not the full batch.
        bb = min(B, max(8, (bb // 8) * 8))
    return bb


def gated_attention(x, V, U, W, *, block_b=None):
    B, N, D = x.shape
    L = V.shape[0]
    if block_b is None:
        block_b = _choose_block_b(B, N, D, L)

    # Pad ragged batches instead of collapsing to block_b=1 (zero bags pool to
    # zero and are sliced off below).
    B_pad = -(-B // block_b) * block_b
    if B_pad != B:
        x = jnp.concatenate(
            [x, jnp.zeros((B_pad - B, N, D), x.dtype)], axis=0)
    R = block_b * N

    # bf16 x stream, fused pre-transposed [D, 2L] weight, lane-dense W row.
    x2 = x.reshape(B_pad * N, D).astype(jnp.bfloat16)
    vu = jnp.concatenate([V.T, U.T], axis=1).astype(jnp.bfloat16)   # [D, 2L]
    w_row = W.reshape(1, L).astype(jnp.float32)

    kernel = functools.partial(_gated_attention_kernel,
                               n_inst=N, block_b=block_b, hidden_l=L)

    # VMEM budget: double-buffered streams + f32 intermediates; clamp to
    # 48 MiB so a v6e-sized block cannot blow v7x's 64 MiB physical VMEM.
    vmem_est = (2 * R * D * 2              # double-buffered bf16 x slab
                + 2 * D * (2 * L) * 2      # double-buffered bf16 VU
                + 2 * block_b * D * 4      # double-buffered f32 output
                + R * (2 * L) * 4          # g
                + R * L * 4                # h
                + R * D * 4)               # f32 x copy for pooling
    vmem_limit = int(min(max(2 * vmem_est, 16 * 1024 * 1024),
                         48 * 1024 * 1024))

    out = pl.pallas_call(
        kernel,
        out_shape=jax.ShapeDtypeStruct((B_pad, D), jnp.float32),
        grid_spec=pltpu.PrefetchScalarGridSpec(
            num_scalar_prefetch=0,
            grid=(B_pad // block_b,),
            in_specs=[
                pl.BlockSpec((R, D), lambda b: (b, 0)),        # x slab (bf16)
                pl.BlockSpec((D, 2 * L), lambda b: (0, 0)),    # [V.T | U.T]
                pl.BlockSpec((1, L), lambda b: (0, 0)),        # W row
            ],
            out_specs=pl.BlockSpec((block_b, D), lambda b: (b, 0)),
        ),
        compiler_params=pltpu.CompilerParams(
            dimension_semantics=("parallel",),
            vmem_limit_bytes=vmem_limit,
        ),
    )(x2, vu, w_row)
    return out[:B]


def _kaiming_uniform(key, shape):
    # torch.nn.init.kaiming_uniform_ defaults: a=0, fan_in = shape[1],
    # gain = sqrt(2), bound = gain * sqrt(3 / fan_in)
    fan_in = shape[1]
    bound = math.sqrt(2.0) * math.sqrt(3.0 / fan_in)
    return jax.random.uniform(key, shape, jnp.float32, -bound, bound)


def _reference(x, V, U, W, *, quantize_x=False):
    """Pure-JAX forward; quantize_x mirrors the kernel's bf16 x stream."""
    if quantize_x:
        xq = x.astype(jnp.bfloat16)
        xm, Vm, Um = xq, V.astype(jnp.bfloat16), U.astype(jnp.bfloat16)
        x_pool = xq.astype(jnp.float32)
    else:
        xm, Vm, Um = x, V, U
        x_pool = x
    t1 = jnp.tanh(jnp.einsum("bnd,ld->bnl", xm, Vm,
                             preferred_element_type=jnp.float32))
    t2 = jax.nn.sigmoid(jnp.einsum("bnd,ld->bnl", xm, Um,
                                   preferred_element_type=jnp.float32))
    scores = jnp.einsum("bnl,lo->bno", t1 * t2, W.astype(jnp.float32))
    weights = jax.nn.softmax(scores, axis=1)
    return jnp.sum(x_pool * weights, axis=1)


if __name__ == "__main__":
    B, N, D, L = 16, 8, 32, 128

    key = jax.random.PRNGKey(0)
    kx, kv, ku, kw = jax.random.split(key, 4)

    x = jax.random.normal(kx, (B, N, D), jnp.float32)
    V = _kaiming_uniform(kv, (L, D))
    U = _kaiming_uniform(ku, (L, D))
    W = _kaiming_uniform(kw, (L, 1))

    out = jax.block_until_ready(gated_attention(x, V, U, W))
    assert out.shape == (B, D)

    # Tight check vs. a reference using the same bf16 x / weight streams.
    ref_tight = _reference(x, V, U, W, quantize_x=True)
    assert jnp.allclose(out, ref_tight, atol=2e-2, rtol=2e-2), \
        "mismatch vs bf16-stream reference"

    # Sanity check vs. the pure-f32 module forward (bf16 streams => looser tol).
    ref_f32 = _reference(x, V, U, W, quantize_x=False)
    assert jnp.allclose(out, ref_f32, atol=1e-1, rtol=1e-1), \
        "mismatch vs f32 reference"

    print("KERNEL_OK")
</pallas_src>

<mosaic_0001>
module attributes {stable_mosaic.version = 11 : i64} {
  func.func @_gated_attention_kernel(%arg0: i32, %arg1: memref<128x32xbf16, #tpu.memory_space<vmem>>, %arg2: memref<32x256xbf16, #tpu.memory_space<vmem>>, %arg3: memref<1x128xf32, #tpu.memory_space<vmem>>, %arg4: memref<16x32xf32, #tpu.memory_space<vmem>>) attributes {dimension_semantics = [#tpu.dimension_semantics<parallel>], iteration_bounds = array<i64: 1>, scalar_prefetch = 0 : i64, scratch_operands = 0 : i64, tpu.core_type = #tpu.core_type<tc>, window_params = [{transform_indices = @transform_0, window_bounds = array<i64: 128, 32>}, {pipeline_mode = #tpu.pipeline_mode<synchronous>, transform_indices = @transform_1, window_bounds = array<i64: 32, 256>}, {pipeline_mode = #tpu.pipeline_mode<synchronous>, transform_indices = @transform_2, window_bounds = array<i64: 1, 128>}, {transform_indices = @transform_3, window_bounds = array<i64: 16, 32>}]} {
    %c0 = arith.constant 0 : index
    %c0_0 = arith.constant 0 : index
    %0 = vector.load %arg1[%c0, %c0_0] : memref<128x32xbf16, #tpu.memory_space<vmem>>, vector<128x32xbf16>
    %c0_1 = arith.constant 0 : index
    %c0_2 = arith.constant 0 : index
    %1 = vector.load %arg2[%c0_1, %c0_2] : memref<32x256xbf16, #tpu.memory_space<vmem>>, vector<32x256xbf16>
    %cst = arith.constant dense<0.000000e+00> : vector<128x256xf32>
    %2 = tpu.matmul %0, %1, %cst {dimension_numbers = #tpu.dot_dimension_numbers<[1], [0], [0], [1], [0, 0, 1, 1], [], []>} : vector<128x32xbf16>, vector<32x256xbf16>, vector<128x256xf32> -> vector<128x256xf32>
    %3 = vector.extract_strided_slice %2 {offsets = [0, 0], sizes = [128, 128], strides = [1, 1]} : vector<128x256xf32> to vector<128x128xf32>
    %4 = math.tanh %3 : vector<128x128xf32>
    %5 = vector.extract_strided_slice %2 {offsets = [0, 128], sizes = [128, 128], strides = [1, 1]} : vector<128x256xf32> to vector<128x128xf32>
    %6 = arith.negf %5 : vector<128x128xf32>
    %7 = math.exp %6 : vector<128x128xf32>
    %cst_3 = arith.constant 1.000000e+00 : f32
    %8 = vector.broadcast %cst_3 : f32 to vector<128x128xf32>
    %9 = arith.addf %8, %7 : vector<128x128xf32>
    %10 = arith.divf %8, %9 : vector<128x128xf32>
    %11 = arith.mulf %4, %10 : vector<128x128xf32>
    %12 = vector.shape_cast %11 : vector<128x128xf32> to vector<16x8x128xf32>
    %c0_4 = arith.constant 0 : index
    %c0_5 = arith.constant 0 : index
    %13 = vector.load %arg3[%c0_4, %c0_5] : memref<1x128xf32, #tpu.memory_space<vmem>>, vector<1x128xf32>
    %14 = vector.shape_cast %13 : vector<1x128xf32> to vector<1x1x128xf32>
    %15 = vector.broadcast %14 : vector<1x1x128xf32> to vector<16x8x128xf32>
    %16 = arith.mulf %12, %15 : vector<16x8x128xf32>
    %cst_6 = arith.constant dense<0.000000e+00> : vector<16x8xf32>
    %17 = vector.multi_reduction <add>, %16, %cst_6 [2] : vector<16x8x128xf32> to vector<16x8xf32>
    %cst_7 = arith.constant dense<0xFF800000> : vector<16xf32>
    %18 = vector.multi_reduction <maximumf>, %17, %cst_7 [1] : vector<16x8xf32> to vector<16xf32>
    %19 = vector.shape_cast %18 : vector<16xf32> to vector<16x1xf32>
    %20 = vector.broadcast %19 : vector<16x1xf32> to vector<16x8xf32>
    %21 = arith.subf %17, %20 : vector<16x8xf32>
    %22 = math.exp %21 : vector<16x8xf32>
    %cst_8 = arith.constant dense<0.000000e+00> : vector<16xf32>
    %23 = vector.multi_reduction <add>, %22, %cst_8 [1] : vector<16x8xf32> to vector<16xf32>
    %24 = vector.shape_cast %23 : vector<16xf32> to vector<16x1xf32>
    %25 = tpu.reciprocal %24 {approx = true} : vector<16x1xf32> -> vector<16x1xf32>
    %26 = vector.broadcast %25 : vector<16x1xf32> to vector<16x8xf32>
    %27 = arith.mulf %22, %26 : vector<16x8xf32>
    %28 = arith.extf %0 : vector<128x32xbf16> to vector<128x32xf32>
    %29 = vector.shape_cast %28 : vector<128x32xf32> to vector<16x8x32xf32>
    %30 = vector.shape_cast %27 : vector<16x8xf32> to vector<16x8x1xf32>
    %31 = vector.broadcast %30 : vector<16x8x1xf32> to vector<16x8x32xf32>
    %32 = arith.mulf %29, %31 : vector<16x8x32xf32>
    %cst_9 = arith.constant dense<0.000000e+00> : vector<16x32xf32>
    %33 = vector.multi_reduction <add>, %32, %cst_9 [1] : vector<16x8x32xf32> to vector<16x32xf32>
    %c0_10 = arith.constant 0 : index
    %c0_11 = arith.constant 0 : index
    %34 = vector.load %arg4[%c0_10, %c0_11] : memref<16x32xf32, #tpu.memory_space<vmem>>, vector<16x32xf32>
    tpu.vector_store %arg4[%c0_10, %c0_11], %33 {strides = array<i32>} : memref<16x32xf32, #tpu.memory_space<vmem>>, vector<16x32xf32>,
    return
  }
  func.func @transform_0(%arg0: i32) -> (i32, i32) {
    %c0_i32 = arith.constant 0 : i32
    %c0_i32_0 = arith.constant 0 : i32
    return %arg0, %c0_i32 : i32, i32
  }
  func.func @transform_1(%arg0: i32) -> (i32, i32) {
    %c0_i32 = arith.constant 0 : i32
    %c0_i32_0 = arith.constant 0 : i32
    %c0_i32_1 = arith.constant 0 : i32
    return %c0_i32, %c0_i32_0 : i32, i32
  }
  func.func @transform_2(%arg0: i32) -> (i32, i32) {
    %c0_i32 = arith.constant 0 : i32
    %c0_i32_0 = arith.constant 0 : i32
    %c0_i32_1 = arith.constant 0 : i32
    return %c0_i32, %c0_i32_0 : i32, i32
  }
  func.func @transform_3(%arg0: i32) -> (i32, i32) {
    %c0_i32 = arith.constant 0 : i32
    %c0_i32_0 = arith.constant 0 : i32
    return %arg0, %c0_i32 : i32, i32
  }
}

</mosaic_0001>

<bundles_post_ra>
// kernel: tpu_custom_call.1
= control target key start
LH: loop header
LB: loop body
LE: loop exit
PB: predicated region body
PF: predicated region fallthrough
CT: control target
= control target key end

     0   :  { %v1416_v2 = vmov 0   ;;  %s1855_s0 = inlined_call_operand.vmem [shape: bf16[128,32], index: 0, kind: input, shape index: {}]   ;;  %s1856_s1 = inlined_call_operand.vmem [shape: bf16[32,256], index: 1, kind: input, shape index: {}]   ;;  %s1857_s2 = inlined_call_operand.vmem [shape: f32[1,128], index: 2, kind: input, shape index: {}]   ;;  %s1858_s3 = inlined_call_operand.hbm [shape: f32[16,32], index: 3, kind: output, shape index: {}]  }
   0x1   :  { %v1230_v0 = vld [vmem:[%s1856_s1 + $0x4] ss:$8 sps:$4 sm:$0xff]   ;;  %v1232_v1 = vld [vmem:[%s1856_s1] ss:$8 sps:$4 sm:$0xff]   ;;  %153 = vmatprep.mubr.bf16.mxu0 %v1416_v2  ;;  %193 = vmatprep.mubr.bf16.mxu1 %v1416_v2  ;;  %v1233_v3 = vld [vmem:[%s1856_s1 + $0x14] ss:$8 sps:$4 sm:$0xff]  }
   0x2   :  { %121 = vmatprep.subr.bf16.mxu0 %v1230_v0  ;;  %1220 = vmatprep.subr.bf16.mxu1 %v1230_v0  ;;  %v1235_v4 = vld [vmem:[%s1856_s1 + $0x10] ss:$8 sps:$4 sm:$0xff]   ;;  %v16_v5 = vld [vmem:[%s1855_s0] sm:$0xff]  }
   0x3   :  { %122 = vmatpush1.bf16.msra.mxu0 %v1232_v1  ;;  %1222 = vmatpush1.bf16.msra.mxu1 %v1232_v1  ;;  %v24_v6 = vld [vmem:[%s1855_s0 + $0x20] sm:$0xff]  }
   0x4   :  { %123 = vmatprep.subr.bf16.mxu0 %v1233_v3  ;;  %1221 = vmatprep.subr.bf16.mxu1 %v1233_v3 }
   0x5   :  { %1229 = vset.pattern.permute.xlu1 %v1416_v2  ;;  %1228 = vset.pattern.permute.xlu0 %v1416_v2 }
   0x6   :  { %8 = vsyncpa [#allocation3], 0  ;;  %vm96_vm0 = vcmask 261120   ;;  %v18_v7 = vld [vmem:[%s1855_s0 + $0x8] sm:$0xff]   ;;  %v20_v9 = vld [vmem:[%s1855_s0 + $0x10] sm:$0xff]   ;;  %vm499_vm1 = vcmask 1041409  }
   0x7   :  { %124 = vmatpush1.bf16.msra.mxu0 %v1235_v4  ;;  %1223 = vmatpush1.bf16.msra.mxu1 %v1235_v4  ;;  %v26_v8 = vld [vmem:[%s1855_s0 + $0x28] sm:$0xff]   ;;  %v28_v10 = vld [vmem:[%s1855_s0 + $0x30] sm:$0xff]   ;;  %v22_v11 = vld [vmem:[%s1855_s0 + $0x18] sm:$0xff]   ;;  %vm501_vm2 = vcmask 1042434   ;;  %vm503_vm3 = vcmask 1043459   ;;  %vm505_vm4 = vcmask 1044484  }
   0x8   :  { %v30_v12 = vld [vmem:[%s1855_s0 + $0x38] sm:$0xff]   ;;  %vm507_vm5 = vcmask 1045509   ;;  %vm509_vm6 = vcmask 1046534   ;;  %vm511_vm7 = vcmask 1047559   ;;  %vm522_vm8 = vcmask 64512  }
   0xa   :  { %1195 = vmatmul.mubr.msk.bf16.vlgmr.msra.gmra.mrb[0].mxu0 %vm96_vm0, %v16_v5  ;;  %1199 = vmatmul.mubr.msk.bf16.vlgmr.msra.gmra.mrb[0].mxu1 %vm96_vm0, %v24_v6 }
   0xb   :  { %163 = vmatprep.mubr.bf16.mxu0 %v1416_v2  ;;  %203 = vmatprep.mubr.bf16.mxu1 %v1416_v2 }
  0x12   :  { %1196 = vmatmul.mubr.msk.bf16.gmra.mrb[4].mxu0 %vm96_vm0, %v18_v7  ;;  %1200 = vmatmul.mubr.msk.bf16.gmra.mrb[4].mxu1 %vm96_vm0, %v26_v8  ;;  %v1501_v8 = vld [vmem:[%s1857_s2] ss:$0 sm:$0xff] }
  0x13   :  { %173 = vmatprep.mubr.bf16.mxu0 %v1416_v2  ;;  %213 = vmatprep.mubr.bf16.mxu1 %v1416_v2 }
  0x1a   :  { %1197 = vmatmul.mubr.msk.bf16.gmra.mrb[8].mxu0 %vm96_vm0, %v20_v9  ;;  %1201 = vmatmul.mubr.msk.bf16.gmra.mrb[8].mxu1 %vm96_vm0, %v28_v10 }
  0x1b   :  { %183 = vmatprep.mubr.bf16.mxu0 %v1416_v2  ;;  %223 = vmatprep.mubr.bf16.mxu1 %v1416_v2 }
  0x22   :  { %1198 = vmatmul.mubr.msk.bf16.gmra.mrb[12].mxu0 %vm96_vm0, %v22_v11  ;;  %1202 = vmatmul.mubr.msk.bf16.gmra.mrb[12].mxu1 %vm96_vm0, %v30_v12 }
  0xdd   :  { %v155_v13 = vpop.f32.mrb[0].mxu0  ;;  %v195_v14 = vpop.f32.mrb[0].mxu1 }
  0xde   :  { %v157_v15 = vpop.f32.mrb[1].mxu0  ;;  %v197_v16 = vpop.f32.mrb[1].mxu1 }
  0xdf   :  { %v1203_v17 = vmul.f32 -1.442695, %v157_v15  ;;  %v1211_v18 = vmul.f32 -1.442695, %v197_v16  ;;  %v159_v19 = vpop.f32.mrb[2].mxu0  ;;  %v199_v20 = vpop.f32.mrb[2].mxu1 }
  0xe0   :  { %v161_v21 = vpop.f32.mrb[3].mxu0  ;;  %v201_v22 = vpop.f32.mrb[3].mxu1 }
  0xe1   :  { %1252 = vpow2.f32 %v1203_v17  ;;  %v1204_v23 = vmul.f32 -1.442695, %v161_v21  ;;  %v1212_v24 = vmul.f32 -1.442695, %v201_v22 }
  0xe2   :  { %1254 = vpow2.f32 %v1211_v18 }
  0xe3   :  { %1256 = vtanh.f32 %v155_v13 }
  0xe4   :  { %1258 = vpow2.f32 %v1204_v23 }
  0xe5   :  { %1260 = vpow2.f32 %v1212_v24  ;;  %v165_v25 = vpop.f32.mrb[4].mxu0  ;;  %v205_v26 = vpop.f32.mrb[4].mxu1 }
  0xe6   :  { %1262 = vtanh.f32 %v195_v14  ;;  %v167_v27 = vpop.f32.mrb[5].mxu0  ;;  %v207_v28 = vpop.f32.mrb[5].mxu1 }
  0xe7   :  { %1264 = vtanh.f32 %v159_v19  ;;  %v1205_v29 = vmul.f32 -1.442695, %v167_v27  ;;  %v1213_v30 = vmul.f32 -1.442695, %v207_v28  ;;  %v169_v31 = vpop.f32.mrb[6].mxu0  ;;  %v209_v32 = vpop.f32.mrb[6].mxu1 }
  0xe8   :  { %1266 = vtanh.f32 %v199_v20  ;;  %v171_v33 = vpop.f32.mrb[7].mxu0  ;;  %v211_v34 = vpop.f32.mrb[7].mxu1 }
  0xe9   :  { %1268 = vpow2.f32 %v1205_v29  ;;  %v1206_v35 = vmul.f32 -1.442695, %v171_v33  ;;  %v1214_v36 = vmul.f32 -1.442695, %v211_v34 }
  0xea   :  { %1270 = vpow2.f32 %v1213_v30 }
  0xeb   :  { %v1253_v37 = vpop.eup %1252  ;;  %1272 = vtanh.f32 %v165_v25 }
  0xec   :  { %v1255_v38 = vpop.eup %1254  ;;  %v298_v39 = vadd.f32 1.0, %v1253_v37  ;;  %1274 = vpow2.f32 %v1206_v35 }
  0xed   :  { %v1257_v40 = vpop.eup %1256  ;;  %v306_v41 = vadd.f32 1.0, %v1255_v38  ;;  %1276 = vpow2.f32 %v1214_v36  ;;  %v1484_v42 = vpop.f32.mrb[8].mxu0 }
  0xee   :  { %v1486_v43 = vpop.f32.mrb[8].mxu1  ;;  %v1259_v44 = vpop.eup %1258  ;;  %1278 = vrcp.f32 %v298_v39 }
  0xef   :  { %v177_v45 = vpop.f32.mrb[9].mxu0  ;;  %v217_v46 = vpop.f32.mrb[9].mxu1  ;;  %1280 = vrcp.f32 %v306_v41  ;;  %v299_v48 = vadd.f32 1.0, %v1259_v44 }
  0xf0   :  { %v1261_v47 = vpop.eup %1260  ;;  %v1488_v49 = vpop.f32.mrb[10].mxu0  ;;  %1282 = vtanh.f32 %v205_v26  ;;  %v1207_v52 = vmul.f32 -1.442695, %v177_v45  ;;  %v1215_v56 = vmul.f32 -1.442695, %v217_v46 }
  0xf1   :  { %v1263_v50 = vpop.eup %1262  ;;  %v307_v51 = vadd.f32 1.0, %v1261_v47  ;;  %v1490_v53 = vpop.f32.mrb[10].mxu1  ;;  %1284 = vrcp.f32 %v299_v48 }
  0xf2   :  { %v181_v54 = vpop.f32.mrb[11].mxu0  ;;  %v1265_v55 = vpop.eup %1264 }
  0xf3   :  { %v221_v57 = vpop.f32.mrb[11].mxu1  ;;  %v1267_v58 = vpop.eup %1266  ;;  %1286 = vrcp.f32 %v307_v51  ;;  %v1208_v11 = vmul.f32 -1.442695, %v181_v54 }
  0xf4   :  { %v1269_v59 = vpop.eup %1268  ;;  %1288 = vtanh.f32 %v169_v31  ;;  %v1216_v15 = vmul.f32 -1.442695, %v221_v57 }
  0xf5   :  { %v1271_v60 = vpop.eup %1270  ;;  %v300_v61 = vadd.f32 1.0, %v1269_v59  ;;  %1290 = vpow2.f32 %v1207_v52  ;;  %v1492_v0 = vpop.f32.mrb[12].mxu0 }
  0xf6   :  { %v1273_v62 = vpop.eup %1272  ;;  %v308_v63 = vadd.f32 1.0, %v1271_v60  ;;  %1292 = vpow2.f32 %v1215_v56  ;;  %v1494_v1 = vpop.f32.mrb[12].mxu1 }
  0xf7   :  { %v1275_v2 = vpop.eup %1274  ;;  %1294 = vrcp.f32 %v300_v61  ;;  %v187_v3 = vpop.f32.mrb[13].mxu0 }
  0xf8   :  { %v227_v4 = vpop.f32.mrb[13].mxu1  ;;  %v1277_v5 = vpop.eup %1276  ;;  %1296 = vrcp.f32 %v308_v63  ;;  %v301_v6 = vadd.f32 1.0, %v1275_v2  ;;  %v1209_v23 = vmul.f32 -1.442695, %v187_v3 }
  0xf9   :  { %v1496_v7 = vpop.f32.mrb[14].mxu0  ;;  %v1279_v9 = vpop.eup %1278  ;;  %1298 = vtanh.f32 %v209_v32  ;;  %v309_v10 = vadd.f32 1.0, %v1277_v5  ;;  %v1217_v31 = vmul.f32 -1.442695, %v227_v4 }
  0xfa   :  { %v1503_v12 = vpop.f32.mrb[14].mxu1  ;;  %v191_v13 = vpop.f32.mrb[15].mxu0  ;;  %1300 = vrcp.f32 %v301_v6  ;;  %v346_v17 = vmul.f32 %v1279_v9, %v1257_v40 }
  0xfb   :  { %v1281_v14 = vpop.eup %1280  ;;  %v231_v16 = vpop.f32.mrb[15].mxu1  ;;  %1302 = vrcp.f32 %v309_v10  ;;  %v1210_v39 = vmul.f32 -1.442695, %v191_v13 }
  0xfc   :  { %v1283_v18 = vpop.eup %1282  ;;  %v354_v19 = vmul.f32 %v1281_v14, %v1263_v50  ;;  %v369_v21 = vmul.f32 %v1501_v8, %v346_v17  ;;  %1304 = vpow2.f32 %v1208_v11 }
  0xfd   :  { %v1285_v20 = vpop.eup %1284  ;;  %1306 = vpow2.f32 %v1216_v15 }
  0xfe   :  { %v1287_v22 = vpop.eup %1286  ;;  %v377_v24 = vmul.f32 %v1501_v8, %v354_v19  ;;  %v347_v25 = vmul.f32 %v1285_v20, %v1265_v55  ;;  %385 = vadd.xlane.f32.xlu0 %v369_v21  ;;  %1308 = vtanh.f32 %v1484_v42  ;;  %v1218_v42 = vmul.f32 -1.442695, %v231_v16 }
  0xff   :  { %v1289_v26 = vpop.eup %1288  ;;  %v355_v27 = vmul.f32 %v1287_v22, %v1267_v58  ;;  %1310 = vtanh.f32 %v1486_v43 }
 0x100   :  { %v1291_v28 = vpop.eup %1290  ;;  %401 = vadd.xlane.f32.xlu1 %v377_v24  ;;  %v370_v32 = vmul.f32 %v1501_v8, %v347_v25  ;;  %1312 = vpow2.f32 %v1209_v23 }
 0x101   :  { %v1293_v29 = vpop.eup %1292  ;;  %v302_v30 = vadd.f32 1.0, %v1291_v28  ;;  %v378_v35 = vmul.f32 %v1501_v8, %v355_v27 }
 0x102   :  { %v1295_v33 = vpop.eup %1294  ;;  %v310_v34 = vadd.f32 1.0, %v1293_v29  ;;  %387 = vadd.xlane.f32.xlu0 %v370_v32 }
 0x103   :  { %v1297_v36 = vpop.eup %1296  ;;  %1314 = vrcp.f32 %v302_v30  ;;  %v348_v37 = vmul.f32 %v1295_v33, %v1273_v62 }
 0x104   :  { %v1299_v38 = vpop.eup %1298  ;;  %1316 = vrcp.f32 %v310_v34  ;;  %403 = vadd.xlane.f32.xlu1 %v378_v35  ;;  %v356_v40 = vmul.f32 %v1297_v36, %v1283_v18 }
 0x105   :  { %v1301_v41 = vpop.eup %1300  ;;  %1318 = vpow2.f32 %v1217_v31  ;;  %v371_v43 = vmul.f32 %v1501_v8, %v348_v37 }
 0x106   :  { %v1303_v44 = vpop.eup %1302  ;;  %v379_v45 = vmul.f32 %v1501_v8, %v356_v40  ;;  %v349_v46 = vmul.f32 %v1301_v41, %v1289_v26  ;;  %1320 = vtanh.f32 %v1488_v49 }
 0x107   :  { %389 = vadd.xlane.f32.xlu0 %v371_v43  ;;  %v357_v47 = vmul.f32 %v1303_v44, %v1299_v38  ;;  %v1305_v48 = vpop.eup %1304  ;;  %1322 = vpow2.f32 %v1210_v39  ;;  %v433_v39 = vlaneseq }
 0x108   :  { %405 = vadd.xlane.f32.xlu1 %v379_v45  ;;  %v1307_v50 = vpop.eup %1306  ;;  %v303_v51 = vadd.f32 1.0, %v1305_v48  ;;  %1324 = vpow2.f32 %v1218_v42  ;;  %v372_v52 = vmul.f32 %v1501_v8, %v349_v46 }
 0x109   :  { %v1309_v54 = vpop.eup %1308  ;;  %1326 = vtanh.f32 %v1490_v53  ;;  %v311_v55 = vadd.f32 1.0, %v1307_v50  ;;  %v380_v56 = vmul.f32 %v1501_v8, %v357_v47  ;;  %v434_v41 = vand.u32 127, %v433_v39 }
 0x10a   :  { %v1311_v57 = vpop.eup %1310  ;;  %1328 = vrcp.f32 %v303_v51  ;;  %v1549_v42 = vshrl.u32 %v433_v39, 7 }
 0x10b   :  { %391 = vadd.xlane.f32.xlu0 %v372_v52  ;;  %v1313_v49 = vpop.eup %1312  ;;  %1330 = vrcp.f32 %v311_v55 }
 0x10c   :  { %407 = vadd.xlane.f32.xlu1 %v380_v56  ;;  %v304_v59 = vadd.f32 1.0, %v1313_v49  ;;  %1332 = vtanh.f32 %v1492_v0  ;;  %v1554_v44 = vsub.s32 %v434_v41, %v1549_v42  ;;  %v1631_v39 = vsub.s32 6, %v1549_v42 }
 0x10d   :  { %v1315_v58 = vpop.eup %1314 }
 0x10e   :  { %v1317_v60 = vpop.eup %1316  ;;  %v350_v61 = vmul.f32 %v1315_v58, %v1309_v54  ;;  %1334 = vrcp.f32 %v304_v59 }
 0x10f   :  { %v1319_v62 = vpop.eup %1318  ;;  %v358_v63 = vmul.f32 %v1317_v60, %v1311_v57  ;;  %1336 = vtanh.f32 %v1494_v1 }
 0x110   :  { %v312_v2 = vadd.f32 1.0, %v1319_v62  ;;  %v373_v53 = vmul.f32 %v1501_v8, %v350_v61  ;;  %v1321_v3 = vpop.eup %1320 }
 0x111   :  { %v381_v4 = vmul.f32 %v1501_v8, %v358_v63  ;;  %v1323_v5 = vpop.eup %1322 }
 0x112   :  { %1338 = vrcp.f32 %v312_v2  ;;  %393 = vadd.xlane.f32.xlu0 %v373_v53  ;;  %v1325_v6 = vpop.eup %1324  ;;  %v305_v9 = vadd.f32 1.0, %v1323_v5 }
 0x113   :  { %1340 = vtanh.f32 %v1496_v7  ;;  %409 = vadd.xlane.f32.xlu1 %v381_v4  ;;  %v1327_v0 = vpop.eup %1326  ;;  %v313_v10 = vadd.f32 1.0, %v1325_v6 }
 0x114   :  { %1342 = vtanh.f32 %v1503_v12  ;;  %v1329_v11 = vpop.eup %1328 }
 0x115   :  { %1344 = vrcp.f32 %v305_v9  ;;  %v1331_v13 = vpop.eup %1330  ;;  %v351_v14 = vmul.f32 %v1329_v11, %v1321_v3 }
 0x116   :  { %1346 = vrcp.f32 %v313_v10  ;;  %v359_v1 = vmul.f32 %v1331_v13, %v1327_v0  ;;  %v1333_v15 = vpop.eup %1332 }
 0x117   :  { %v374_v16 = vmul.f32 %v1501_v8, %v351_v14 }
 0x118   :  { %v1335_v17 = vpop.eup %1334  ;;  %v382_v18 = vmul.f32 %v1501_v8, %v359_v1 }
 0x119   :  { %395 = vadd.xlane.f32.xlu0 %v374_v16  ;;  %v352_v7 = vmul.f32 %v1335_v17, %v1333_v15  ;;  %v1337_v19 = vpop.eup %1336 }
 0x11a   :  { %411 = vadd.xlane.f32.xlu1 %v382_v18 }
 0x11b   :  { %v375_v12 = vmul.f32 %v1501_v8, %v352_v7 }
 0x11c   :  { %v1339_v20 = vpop.eup %1338 }
 0x11d   :  { %v1341_v21 = vpop.eup %1340  ;;  %v360_v22 = vmul.f32 %v1339_v20, %v1337_v19  ;;  %397 = vadd.xlane.f32.xlu0 %v375_v12  ;;  %v1609_v20 = vsub.s32 0, %v1549_v42  ;;  %v1612_v12 = vsub.s32 1, %v1549_v42 }
 0x11e   :  { %v1343_v23 = vpop.eup %1342 }
 0x11f   :  { %v1345_v24 = vpop.eup %1344  ;;  %v383_v25 = vmul.f32 %v1501_v8, %v360_v22  ;;  %v1617_v22 = vsub.s32 4, %v1549_v42 }
 0x120   :  { %v1347_v26 = vpop.eup %1346  ;;  %v353_v27 = vmul.f32 %v1345_v24, %v1341_v21 }
 0x121   :  { %413 = vadd.xlane.f32.xlu1 %v383_v25  ;;  %v361_v28 = vmul.f32 %v1347_v26, %v1343_v23  ;;  %v1624_v26 = vsub.s32 5, %v1549_v42 }
 0x122   :  { %v376_v29 = vmul.f32 %v1501_v8, %v353_v27 }
 0x123   :  { %v384_v30 = vmul.f32 %v1501_v8, %v361_v28 }
 0x124   :  { %399 = vadd.xlane.f32.xlu0 %v376_v29 }
 0x125   :  { %415 = vadd.xlane.f32.xlu1 %v384_v30 }
 0x18b   :  { %v1529_v31 = vpop.xlane.xlu0 %385 }
 0x18c   :  { %v438_v51 = vrot.slane %v1529_v31, %v1554_v44 }
 0x18d   :  { %v1531_v32 = vpop.xlane.xlu1 %401 }
 0x18e   :  { %v470_v55 = vrot.slane %v1531_v32, %v1554_v44 }
 0x18f   :  { %v1533_v33 = vpop.xlane.xlu0 %387 }
 0x190   :  { %v442_v46 = vrot.slane %v1533_v33, %v1554_v44 }
 0x191   :  { %v1535_v34 = vpop.xlane.xlu1 %403 }
 0x192   :  { %v474_v47 = vrot.slane %v1535_v34, %v1554_v44  ;;  %v500_v49 = vsel %vm499_vm1, %v442_v46, %v438_v51 }
 0x194   :  { %v1537_v35 = vpop.xlane.xlu0 %389  ;;  %v513_v61 = vsel %vm499_vm1, %v474_v47, %v470_v55 }
 0x195   :  { %v1539_v36 = vpop.xlane.xlu1 %405  ;;  %v446_v48 = vrot.slane %v1537_v35, %v1554_v44 }
 0x196   :  { %v478_v52 = vrot.slane %v1539_v36, %v1554_v44 }
 0x197   :  { %v502_v62 = vsel %vm501_vm2, %v446_v48, %v500_v49  ;;  %v1636_v48 = vsub.s32 2, %v1549_v42 }
 0x198   :  { %v1541_v37 = vpop.xlane.xlu0 %391  ;;  %v514_v53 = vsel %vm501_vm2, %v478_v52, %v513_v61 }
 0x199   :  { %v1543_v38 = vpop.xlane.xlu1 %407  ;;  %v450_v54 = vrot.slane %v1541_v37, %v1554_v44 }
 0x19a   :  { %v482_v56 = vrot.slane %v1543_v38, %v1554_v44 }
 0x19b   :  { %v504_v3 = vsel %vm503_vm3, %v450_v54, %v502_v62 }
 0x19c   :  { %v515_v5 = vsel %vm503_vm3, %v482_v56, %v514_v53 }
 0x19f   :  { %v1545_v8 = vpop.xlane.xlu0 %393 }
 0x1a0   :  { %v1547_v40 = vpop.xlane.xlu1 %409  ;;  %v454_v57 = vrot.slane %v1545_v8, %v1554_v44 }
 0x1a1   :  { %v486_v58 = vrot.slane %v1547_v40, %v1554_v44 }
 0x1a2   :  { %v506_v6 = vsel %vm505_vm4, %v454_v57, %v504_v3 }
 0x1a3   :  { %v516_v0 = vsel %vm505_vm4, %v486_v58, %v515_v5  ;;  %v1649_v58 = vsub.s32 3, %v1549_v42 }
 0x1a6   :  { %v1551_v43 = vpop.xlane.xlu0 %395 }
 0x1a7   :  { %v1556_v45 = vpop.xlane.xlu1 %411  ;;  %v458_v59 = vrot.slane %v1551_v43, %v1554_v44 }
 0x1a8   :  { %v490_v63 = vrot.slane %v1556_v45, %v1554_v44 }
 0x1a9   :  { %v508_v13 = vsel %vm507_vm5, %v458_v59, %v506_v6 }
 0x1aa   :  { %v1564_v50 = vpop.xlane.xlu0 %397  ;;  %v517_v1 = vsel %vm507_vm5, %v490_v63, %v516_v0 }
 0x1ab   :  { %v462_v2 = vrot.slane %v1564_v50, %v1554_v44 }
 0x1ad   :  { %v510_v15 = vsel %vm509_vm6, %v462_v2, %v508_v13 }
 0x1ae   :  { %v414_v60 = vpop.xlane.xlu1 %413 }
 0x1af   :  { %v494_v4 = vrot.slane %v414_v60, %v1554_v44 }
 0x1b1   :  { %v1594_v9 = vpop.xlane.xlu0 %399  ;;  %v518_v16 = vsel %vm509_vm6, %v494_v4, %v517_v1 }
 0x1b2   :  { %v416_v10 = vpop.xlane.xlu1 %415  ;;  %v466_v11 = vrot.slane %v1594_v9, %v1554_v44 }
 0x1b3   :  { %v498_v14 = vrot.slane %v416_v10, %v1554_v44 }
 0x1b4   :  { %v512_v17 = vsel %vm511_vm7, %v466_v11, %v510_v15 }
 0x1b5   :  { %v519_v18 = vsel %vm511_vm7, %v498_v14, %v518_v16  ;;  %v523_v7 = vsel %vm522_vm8, %v512_v17, -inf }
 0x1b6   :  { %v526_v19 = vsel %vm522_vm8, %v519_v18, -inf  ;;  %524 = vmax.xlane.f32.xlu0 %v523_v7 }
 0x1b7   :  { %527 = vmax.xlane.f32.xlu1 %v526_v19 }
 0x243   :  { %v1614_v21 = vpop.xlane.xlu0 %524 }
 0x244   :  { %v528_v23 = vpop.xlane.xlu1 %527  ;;  %v534_v24 = vrot.slane %v1614_v21, %v1609_v20  ;;  %v538_v25 = vrot.slane %v1614_v21, %v1612_v12  ;;  %v542_v49 = vrot.slane %v1614_v21, %v1636_v48  ;;  %v550_v13 = vrot.slane %v1614_v21, %v1617_v22 }
 0x245   :  { %v582_v27 = vrot.slane %v528_v23, %v1617_v22  ;;  %v566_v28 = vrot.slane %v528_v23, %v1609_v20  ;;  %v586_v41 = vrot.slane %v528_v23, %v1624_v26  ;;  %v570_v51 = vrot.slane %v528_v23, %v1612_v12 }
 0x246   :  { %v611_v29 = vsub.f32 %v1529_v31, %v534_v24  ;;  %v612_v30 = vsub.f32 %v1533_v33, %v538_v25  ;;  %v1641_v31 = vsub.s32 7, %v1549_v42  ;;  %v590_v33 = vrot.slane %v528_v23, %v1631_v39 }
 0x247   :  { %v623_v46 = vsub.f32 %v1547_v40, %v582_v27  ;;  %v619_v52 = vsub.f32 %v1531_v32, %v566_v28  ;;  %v624_v55 = vsub.f32 %v1556_v45, %v586_v41  ;;  %v620_v40 = vsub.f32 %v1535_v34, %v570_v51 }
 0x248   :  { %v627_v47 = vmul.f32 1.442695, %v611_v29  ;;  %v629_v54 = vmul.f32 1.442695, %v612_v30  ;;  %v594_v32 = vrot.slane %v528_v23, %v1641_v31  ;;  %v625_v59 = vsub.f32 %v414_v60, %v590_v33 }
 0x249   :  { %v651_v56 = vmul.f32 1.442695, %v623_v46  ;;  %v643_v57 = vmul.f32 1.442695, %v619_v52  ;;  %v653_v61 = vmul.f32 1.442695, %v624_v55  ;;  %v574_v62 = vrot.slane %v528_v23, %v1636_v48 }
 0x24a   :  { %1348 = vpow2.f32 %v627_v47  ;;  %v645_v45 = vmul.f32 1.442695, %v620_v40  ;;  %v613_v63 = vsub.f32 %v1537_v35, %v542_v49  ;;  %v626_v34 = vsub.f32 %v416_v10, %v594_v32 }
 0x24b   :  { %1350 = vpow2.f32 %v629_v54  ;;  %v655_v2 = vmul.f32 1.442695, %v625_v59  ;;  %v621_v53 = vsub.f32 %v1539_v36, %v574_v62  ;;  %v546_v42 = vrot.slane %v1614_v21, %v1649_v58 }
 0x24c   :  { %1352 = vpow2.f32 %v651_v56  ;;  %v631_v3 = vmul.f32 1.442695, %v613_v63  ;;  %v657_v5 = vmul.f32 1.442695, %v626_v34  ;;  %v578_v35 = vrot.slane %v528_v23, %v1649_v58 }
 0x24d   :  { %1354 = vpow2.f32 %v643_v57  ;;  %v647_v6 = vmul.f32 1.442695, %v621_v53  ;;  %v614_v36 = vsub.f32 %v1541_v37, %v546_v42  ;;  %v554_v16 = vrot.slane %v1614_v21, %v1624_v26 }
 0x24e   :  { %1356 = vpow2.f32 %v653_v61  ;;  %v622_v11 = vsub.f32 %v1543_v38, %v578_v35  ;;  %v615_v17 = vsub.f32 %v1545_v8, %v550_v13  ;;  %v558_v7 = vrot.slane %v1614_v21, %v1631_v39 }
 0x24f   :  { %1358 = vpow2.f32 %v645_v45  ;;  %v633_v14 = vmul.f32 1.442695, %v614_v36  ;;  %v616_v19 = vsub.f32 %v1551_v43, %v554_v16  ;;  %v562_v8 = vrot.slane %v1614_v21, %v1641_v31 }
 0x250   :  { %1360 = vpow2.f32 %v655_v2  ;;  %v649_v15 = vmul.f32 1.442695, %v622_v11  ;;  %v635_v23 = vmul.f32 1.442695, %v615_v17  ;;  %v617_v27 = vsub.f32 %v1564_v50, %v558_v7 }
 0x251   :  { %1362 = vpow2.f32 %v631_v3  ;;  %v637_v28 = vmul.f32 1.442695, %v616_v19  ;;  %v618_v43 = vsub.f32 %v1594_v9, %v562_v8 }
 0x252   :  { %1364 = vpow2.f32 %v657_v5  ;;  %v639_v30 = vmul.f32 1.442695, %v617_v27 }
 0x253   :  { %1366 = vpow2.f32 %v647_v6  ;;  %v641_v46 = vmul.f32 1.442695, %v618_v43 }
 0x254   :  { %v1657_v4 = vpop.eup %1348  ;;  %1368 = vpow2.f32 %v633_v14 }
 0x255   :  { %v1659_v60 = vpop.eup %1350  ;;  %676 = vperm.xlu0 %1228, %v1657_v4   ;;  %1370 = vpow2.f32 %v649_v15 }
 0x256   :  { %679 = vperm.xlu1 %1229, %v1659_v60   ;;  %v1665_v0 = vpop.eup %1352  ;;  %1372 = vpow2.f32 %v635_v23 }
 0x257   :  { %v1667_v10 = vpop.eup %1354  ;;  %1374 = vpow2.f32 %v637_v28 }
 0x258   :  { %v1674_v1 = vpop.eup %1356  ;;  %1376 = vpow2.f32 %v639_v30 }
 0x259   :  { %712 = vperm.xlu0 %1228, %v1665_v0   ;;  %v1676_v37 = vpop.eup %1358  ;;  %1378 = vpow2.f32 %v641_v46 }
 0x25a   :  { %700 = vperm.xlu1 %1229, %v1667_v10   ;;  %v1683_v38 = vpop.eup %1360 }
 0x25b   :  { %v1685_v18 = vpop.eup %1362 }
 0x25c   :  { %v1692_v24 = vpop.eup %1364 }
 0x25d   :  { %715 = vperm.xlu0 %1228, %v1674_v1   ;;  %v1694_v25 = vpop.eup %1366 }
 0x25e   :  { %703 = vperm.xlu1 %1229, %v1676_v37   ;;  %v1701_v29 = vpop.eup %1368 }
 0x25f   :  { %v1705_v41 = vpop.eup %1370 }
 0x260   :  { %v1708_v47 = vpop.eup %1372 }
 0x261   :  { %718 = vperm.xlu0 %1228, %v1683_v38   ;;  %v1711_v50 = vpop.eup %1374 }
 0x262   :  { %682 = vperm.xlu1 %1229, %v1685_v18   ;;  %v1714_v21 = vpop.eup %1376 }
 0x263   :  { %v1717_v9 = vpop.eup %1378 }
 0x265   :  { %721 = vperm.xlu0 %1228, %v1692_v24  }
 0x266   :  { %706 = vperm.xlu1 %1229, %v1694_v25  }
 0x26a   :  { %685 = vperm.xlu1 %1229, %v1701_v29  }
 0x26e   :  { %709 = vperm.xlu1 %1229, %v1705_v41  }
 0x272   :  { %688 = vperm.xlu1 %1229, %v1708_v47  }
 0x276   :  { %691 = vperm.xlu1 %1229, %v1711_v50  }
 0x27a   :  { %694 = vperm.xlu1 %1229, %v1714_v21  }
 0x27e   :  { %697 = vperm.xlu1 %1229, %v1717_v9  }
 0x2d4   :  { %v677_v52 = vpop.permute.xlu0 %676 }
 0x2d5   :  { %v680_v51 = vpop.permute.xlu1 %679  ;;  %v726_v19 = vrot.slane %v677_v52, %v1554_v44 }
 0x2d6   :  { %v730_v7 = vrot.slane %v680_v51, %v1554_v44 }
 0x2d8   :  { %v713_v33 = vpop.permute.xlu0 %712  ;;  %v787_v43 = vsel %vm499_vm1, %v730_v7, %v726_v19 }
 0x2d9   :  { %v701_v54 = vpop.permute.xlu1 %700  ;;  %v774_v2 = vrot.slane %v713_v33, %v1554_v44 }
 0x2da   :  { %v758_v62 = vrot.slane %v701_v54, %v1554_v44 }
 0x2dc   :  { %v716_v40 = vpop.permute.xlu0 %715 }
 0x2dd   :  { %v704_v55 = vpop.permute.xlu1 %703  ;;  %v778_v3 = vrot.slane %v716_v40, %v1554_v44 }
 0x2de   :  { %v762_v59 = vrot.slane %v704_v55, %v1554_v44 }
 0x2e0   :  { %v719_v49 = vpop.permute.xlu0 %718  ;;  %v794_v63 = vsel %vm499_vm1, %v762_v59, %v758_v62 }
 0x2e1   :  { %v683_v56 = vpop.permute.xlu1 %682  ;;  %v782_v35 = vrot.slane %v719_v49, %v1554_v44 }
 0x2e2   :  { %v734_v23 = vrot.slane %v683_v56, %v1554_v44 }
 0x2e4   :  { %v722_v42 = vpop.permute.xlu0 %721  ;;  %v788_v46 = vsel %vm501_vm2, %v734_v23, %v787_v43 }
 0x2e5   :  { %v707_v57 = vpop.permute.xlu1 %706  ;;  %v786_v11 = vrot.slane %v722_v42, %v1554_v44 }
 0x2e6   :  { %v766_v61 = vrot.slane %v707_v57, %v1554_v44 }
 0x2e8   :  { %v795_v53 = vsel %vm501_vm2, %v766_v61, %v794_v63 }
 0x2e9   :  { %v686_v32 = vpop.permute.xlu1 %685 }
 0x2ea   :  { %v738_v8 = vrot.slane %v686_v32, %v1554_v44 }
 0x2ec   :  { %v789_v51 = vsel %vm503_vm3, %v738_v8, %v788_v46  ;;  %v1386_v46 = vld [vmem:[%s1855_s0 + $0x8] sm:$0xff]  }
 0x2ed   :  { %v710_v45 = vpop.permute.xlu1 %709 }
 0x2ee   :  { %v770_v34 = vrot.slane %v710_v45, %v1554_v44 }
 0x2f0   :  { %v796_v5 = vsel %vm503_vm3, %v770_v34, %v795_v53 }
 0x2f1   :  { %v797_v6 = vsel %vm505_vm4, %v774_v2, %v796_v5  ;;  %v689_v36 = vpop.permute.xlu1 %688 }
 0x2f2   :  { %v798_v13 = vsel %vm507_vm5, %v778_v3, %v797_v6  ;;  %v742_v27 = vrot.slane %v689_v36, %v1554_v44 }
 0x2f3   :  { %v799_v14 = vsel %vm509_vm6, %v782_v35, %v798_v13 }
 0x2f4   :  { %v800_v15 = vsel %vm511_vm7, %v786_v11, %v799_v14  ;;  %v790_v52 = vsel %vm505_vm4, %v742_v27, %v789_v51 }
 0x2f5   :  { %v692_v16 = vpop.permute.xlu1 %691  ;;  %v806_v17 = vsel %vm522_vm8, %v800_v15, 0.0 }
 0x2f6   :  { %807 = vadd.xlane.f32.xlu0 %v806_v17  ;;  %v746_v30 = vrot.slane %v692_v16, %v1554_v44 }
 0x2f8   :  { %v791_v55 = vsel %vm507_vm5, %v746_v30, %v790_v52 }
 0x2f9   :  { %v695_v28 = vpop.permute.xlu1 %694 }
 0x2fa   :  { %v750_v54 = vrot.slane %v695_v28, %v1554_v44 }
 0x2fc   :  { %v792_v40 = vsel %vm509_vm6, %v750_v54, %v791_v55  ;;  %v911_v54 = vunpack.c.l.bf16 %v1386_v46 }
 0x2fd   :  { %v698_v33 = vpop.permute.xlu1 %697 }
 0x2fe   :  { %v754_v56 = vrot.slane %v698_v33, %v1554_v44  ;;  %v1387_v33 = vld [vmem:[%s1855_s0 + $0x28] sm:$0xff]  }
 0x2ff   :  { %v919_v55 = vunpack.c.l.bf16 %v1387_v33 }
 0x300   :  { %v793_v57 = vsel %vm511_vm7, %v754_v56, %v792_v40 }
 0x301   :  { %v803_v49 = vsel %vm522_vm8, %v793_v57, 0.0 }
 0x302   :  { %804 = vadd.xlane.f32.xlu1 %v803_v49 }
 0x383   :  { %v808_v32 = vpop.xlane.xlu0 %807 }
 0x384   :  { %1380 = vrcp.f32 %v808_v32 }
 0x38e   :  { %v1381_v61 = vpop.eup %1380 }
 0x38f   :  { %v805_v59 = vpop.xlane.xlu1 %804  ;;  %v852_v2 = vrot.slane %v1381_v61, %v1612_v12  ;;  %v848_v53 = vrot.slane %v1381_v61, %v1609_v20  ;;  %v856_v5 = vrot.slane %v1381_v61, %v1636_v48  ;;  %v864_v6 = vrot.slane %v1381_v61, %v1617_v22 }
 0x390   :  { %1382 = vrcp.f32 %v805_v59  ;;  %v868_v36 = vrot.slane %v1381_v61, %v1624_v26  ;;  %v872_v11 = vrot.slane %v1381_v61, %v1631_v39  ;;  %v876_v13 = vrot.slane %v1381_v61, %v1641_v31 }
 0x391   :  { %v902_v42 = vmul.f32 %v1676_v37, %v852_v2  ;;  %v901_v3 = vmul.f32 %v1667_v10, %v848_v53 }
 0x39a   :  { %v1383_v62 = vpop.eup %1382 }
 0x39b   :  { %v820_v45 = vrot.slane %v1383_v62, %v1612_v12  ;;  %v816_v63 = vrot.slane %v1383_v62, %v1609_v20  ;;  %v824_v35 = vrot.slane %v1383_v62, %v1636_v48  ;;  %v860_v12 = vrot.slane %v1381_v61, %v1649_v58 }
 0x39c   :  { %v828_v20 = vrot.slane %v1383_v62, %v1649_v58  ;;  %v832_v48 = vrot.slane %v1383_v62, %v1617_v22  ;;  %v836_v58 = vrot.slane %v1383_v62, %v1624_v26  ;;  %v840_v22 = vrot.slane %v1383_v62, %v1631_v39  ;;  %v1384_v39 = vld [vmem:[%s1855_s0] sm:$0xff]  }
 0x39d   :  { %v894_v34 = vmul.f32 %v1659_v60, %v820_v45  ;;  %v893_v44 = vmul.f32 %v1657_v4, %v816_v63  ;;  %v903_v60 = vmul.f32 %v1694_v25, %v856_v5  ;;  %v895_v4 = vmul.f32 %v1685_v18, %v824_v35  ;;  %v1388_v35 = vld [vmem:[%s1855_s0 + $0x10] sm:$0xff]  }
 0x39e   :  { %v904_v37 = vmul.f32 %v1705_v41, %v860_v12  ;;  %v896_v10 = vmul.f32 %v1701_v29, %v828_v20  ;;  %v905_v25 = vmul.f32 %v1665_v0, %v864_v6  ;;  %v897_v18 = vmul.f32 %v1708_v47, %v832_v48  ;;  %v1389_v48 = vld [vmem:[%s1855_s0 + $0x30] sm:$0xff]  }
 0x39f   :  { %932 = vperm.xlu1 %1229, %v894_v34   ;;  %927 = vperm.xlu0 %1228, %v893_v44   ;;  %v906_v41 = vmul.f32 %v1674_v1, %v868_v36  ;;  %v898_v29 = vmul.f32 %v1711_v50, %v836_v58  ;;  %v907_v0 = vmul.f32 %v1683_v38, %v872_v11  ;;  %v910_v14 = vunpack.c.h.bf16 %v1384_v39 }
 0x3a0   :  { %v899_v47 = vmul.f32 %v1714_v21, %v840_v22  ;;  %v844_v26 = vrot.slane %v1383_v62, %v1641_v31  ;;  %v908_v1 = vmul.f32 %v1692_v24, %v876_v13  ;;  %v909_v38 = vunpack.c.l.bf16 %v1384_v39  ;;  %v1385_v31 = vld [vmem:[%s1855_s0 + $0x20] sm:$0xff]  }
 0x3a1   :  { %v917_v7 = vunpack.c.l.bf16 %v1385_v31  ;;  %v918_v24 = vunpack.c.h.bf16 %v1385_v31  ;;  %v912_v63 = vunpack.c.h.bf16 %v1386_v46  ;;  %v920_v34 = vunpack.c.h.bf16 %v1387_v33 }
 0x3a2   :  { %v900_v50 = vmul.f32 %v1717_v9, %v844_v26 }
 0x3a3   :  { %972 = vperm.xlu0 %1228, %v902_v42   ;;  %967 = vperm.xlu1 %1229, %v901_v3  }
 0x3a7   :  { %977 = vperm.xlu0 %1228, %v903_v60   ;;  %937 = vperm.xlu1 %1229, %v895_v4   ;;  %v913_v60 = vunpack.c.l.bf16 %v1388_v35 }
 0x3ab   :  { %982 = vperm.xlu0 %1228, %v904_v37   ;;  %942 = vperm.xlu1 %1229, %v896_v10  }
 0x3af   :  { %987 = vperm.xlu0 %1228, %v905_v25   ;;  %947 = vperm.xlu1 %1229, %v897_v18   ;;  %v921_v25 = vunpack.c.l.bf16 %v1389_v48 }
 0x3b3   :  { %992 = vperm.xlu0 %1228, %v906_v41   ;;  %952 = vperm.xlu1 %1229, %v898_v29  }
 0x3b7   :  { %997 = vperm.xlu0 %1228, %v907_v0   ;;  %957 = vperm.xlu1 %1229, %v899_v47   ;;  %v914_v0 = vunpack.c.h.bf16 %v1388_v35 }
 0x3bb   :  { %1002 = vperm.xlu0 %1228, %v908_v1   ;;  %962 = vperm.xlu1 %1229, %v900_v50  }
 0x41e   :  { %v933_v15 = vpop.permute.xlu1 %932  ;;  %v928_v21 = vpop.permute.xlu0 %927 }
 0x41f   :  { %v1006_v16 = vmul.f32 %v933_v15, %v910_v14  ;;  %v1005_v17 = vmul.f32 %v928_v21, %v909_v38  ;;  %v922_v38 = vunpack.c.h.bf16 %v1389_v48 }
 0x421   :  { %v1028_v9 = vsel %vm96_vm0, %v1006_v16, 0.0  ;;  %v1021_v19 = vsel %vm96_vm0, %v1005_v17, 0.0  ;;  %v1390_v16 = vld [vmem:[%s1855_s0 + $0x18] sm:$0xff]  }
 0x422   :  { %v1029_v23 = vrot.slane %v1028_v9, 4  ;;  %v1022_v8 = vrot.slane %v1021_v19, 4  ;;  %v968_v27 = vpop.permute.xlu1 %967  ;;  %v973_v28 = vpop.permute.xlu0 %972  ;;  %v915_v17 = vunpack.c.l.bf16 %v1390_v16 }
 0x423   :  { %v1013_v43 = vmul.f32 %v968_v27, %v917_v7  ;;  %v1014_v30 = vmul.f32 %v973_v28, %v918_v24 }
 0x424   :  { %v1030_v51 = vadd.f32 %v1029_v23, %v1028_v9  ;;  %v1023_v52 = vadd.f32 %v1022_v8, %v1021_v19 }
 0x425   :  { %v1077_v56 = vsel %vm96_vm0, %v1013_v43, 0.0  ;;  %v1084_v40 = vsel %vm96_vm0, %v1014_v30, 0.0 }
 0x426   :  { %v1031_v57 = vrot.slane %v1030_v51, 2  ;;  %v1078_v49 = vrot.slane %v1077_v56, 4  ;;  %v1085_v32 = vrot.slane %v1084_v40, 4  ;;  %v938_v59 = vpop.permute.xlu1 %937  ;;  %v978_v61 = vpop.permute.xlu0 %977  ;;  %v1024_v62 = vrot.slane %v1023_v52, 2 }
 0x427   :  { %v1007_v45 = vmul.f32 %v938_v59, %v911_v54  ;;  %v1015_v2 = vmul.f32 %v978_v61, %v919_v55  ;;  %v1391_v55 = vld [vmem:[%s1855_s0 + $0x38] sm:$0xff]   ;;  %s1417_s0 = smov [#allocation2]  }
 0x428   :  { %v1079_v44 = vadd.f32 %v1078_v49, %v1077_v56  ;;  %v1086_v53 = vadd.f32 %v1085_v32, %v1084_v40  ;;  %v1032_v42 = vadd.f32 %v1031_v57, %v1030_v51  ;;  %v1025_v4 = vadd.f32 %v1024_v62, %v1023_v52  ;;  %s1172_s24 = sshll.u32 %s1417_s0, 4  ;;  %s1173_s24 = int_to_ptr.vmem [resolvable:$true] %s1172_s24 }
 0x429   :  { %v1035_v12 = vsel %vm96_vm0, %v1007_v45, 0.0  ;;  %v1091_v6 = vsel %vm96_vm0, %v1015_v2, 0.0  ;;  %v923_v56 = vunpack.c.l.bf16 %v1391_v55  ;;  %v916_v40 = vunpack.c.h.bf16 %v1390_v16  ;;  %s1392_s25 = scalar_lea.vmem %s1173_s24, 256  ;;  %p1397_p1 = scmp.lt.s32.totalorder %s1173_s24, %s1173_s24 }
 0x42a   :  { %v943_v3 = vpop.permute.xlu1 %942  ;;  %v983_v5 = vpop.permute.xlu0 %982  ;;  %v1080_v10 = vrot.slane %v1079_v44, 2  ;;  %v1087_v18 = vrot.slane %v1086_v53, 2  ;;  %v1033_v41 = vrot.slane %v1032_v42, 1  ;;  %v1036_v29 = vrot.slane %v1035_v12, 4  ;;  %p1393_p0 = scmp.ne.s32.totalorder %s1173_s24, %s1392_s25  ;;  %p1398_p2 = scmp.lt.s32.totalorder %s1392_s25, %s1392_s25 }
 0x42b   :  { %v1008_v20 = vmul.f32 %v943_v3, %v912_v63  ;;  %v1016_v37 = vmul.f32 %v983_v5, %v920_v34  ;;  %v1026_v47 = vrot.slane %v1025_v4, 1  ;;  %v1092_v13 = vrot.slane %v1091_v6, 4 }
 0x42c   :  { %v1081_v50 = vadd.f32 %v1080_v10, %v1079_v44  ;;  %v1088_v15 = vadd.f32 %v1087_v18, %v1086_v53  ;;  %v1034_v31 = vadd.f32 %v1033_v41, %v1032_v42  ;;  %v1037_v7 = vadd.f32 %v1036_v29, %v1035_v12  ;;  %p1399_p3 = por %p1398_p2, %p1397_p1 }
 0x42d   :  { %v1042_v36 = vsel %vm96_vm0, %v1008_v20, 0.0  ;;  %v1098_v58 = vsel %vm96_vm0, %v1016_v37, 0.0  ;;  %v1027_v8 = vadd.f32 %v1026_v47, %v1025_v4  ;;  %v1093_v27 = vadd.f32 %v1092_v13, %v1091_v6 }
 0x42e   :  { %v948_v11 = vpop.permute.xlu1 %947  ;;  %v988_v22 = vpop.permute.xlu0 %987  ;;  %v1043_v26 = vrot.slane %v1042_v36, 4  ;;  %v1099_v39 = vrot.slane %v1098_v58, 4  ;;  %v1082_v30 = vrot.slane %v1081_v50, 1  ;;  %v1089_v52 = vrot.slane %v1088_v15, 1  ;;  %p1400_p4 = pnand %p1399_p3, %p1393_p0 }
 0x42f   :  { %v1009_v1 = vmul.f32 %v948_v11, %v913_v60  ;;  %v1017_v14 = vmul.f32 %v988_v22, %v921_v25  ;;  %v1038_v57 = vrot.slane %v1037_v7, 2  ;;  %v1821_v45 = vsel %vm499_vm1, %v1034_v31, %v1027_v8 }
 0x430   :  { %v1044_v28 = vadd.f32 %v1043_v26, %v1042_v36  ;;  %v1100_v46 = vadd.f32 %v1099_v39, %v1098_v58  ;;  %v1094_v63 = vrot.slane %v1093_v27, 2  ;;  %v924_v44 = vunpack.c.h.bf16 %v1391_v55 }
 0x431   :  { %v1049_v21 = vsel %vm96_vm0, %v1009_v1, 0.0  ;;  %v1105_v9 = vsel %vm96_vm0, %v1017_v14, 0.0  ;;  %v1083_v2 = vadd.f32 %v1082_v30, %v1081_v50  ;;  %v1090_v5 = vadd.f32 %v1089_v52, %v1088_v15 }
 0x432   :  { %v1050_v24 = vrot.slane %v1049_v21, 4  ;;  %v953_v19 = vpop.permute.xlu1 %952  ;;  %v993_v23 = vpop.permute.xlu0 %992  ;;  %v1106_v43 = vrot.slane %v1105_v9, 4  ;;  %v1045_v34 = vrot.slane %v1044_v28, 2  ;;  %v1101_v53 = vrot.slane %v1100_v46, 2 }
 0x433   :  { %v1010_v54 = vmul.f32 %v953_v19, %v914_v0  ;;  %v1018_v51 = vmul.f32 %v993_v23, %v922_v38  ;;  %v1039_v12 = vadd.f32 %v1038_v57, %v1037_v7  ;;  %v1095_v25 = vadd.f32 %v1094_v63, %v1093_v27 }
 0x434   :  { %v1051_v33 = vadd.f32 %v1050_v24, %v1049_v21  ;;  %v1107_v49 = vadd.f32 %v1106_v43, %v1105_v9  ;;  %v1046_v18 = vadd.f32 %v1045_v34, %v1044_v28  ;;  %v1102_v41 = vadd.f32 %v1101_v53, %v1100_v46 }
 0x435   :  { %v1056_v32 = vsel %vm96_vm0, %v1010_v54, 0.0  ;;  %v1112_v59 = vsel %vm96_vm0, %v1018_v51, 0.0  ;;  %v1040_v1 = vrot.slane %v1039_v12, 1 }
 0x436   :  { %v958_v61 = vpop.permute.xlu1 %957  ;;  %v998_v62 = vpop.permute.xlu0 %997  ;;  %v1057_v42 = vrot.slane %v1056_v32, 4  ;;  %v1113_v3 = vrot.slane %v1112_v59, 4  ;;  %v1052_v35 = vrot.slane %v1051_v33, 2  ;;  %v1108_v20 = vrot.slane %v1107_v49, 2 }
 0x437   :  { %v1011_v60 = vmul.f32 %v958_v61, %v915_v17  ;;  %v1019_v4 = vmul.f32 %v998_v62, %v923_v56  ;;  %v1096_v17 = vrot.slane %v1095_v25, 1  ;;  %v1047_v31 = vrot.slane %v1046_v18, 1 }
 0x438   :  { %v1058_v37 = vadd.f32 %v1057_v42, %v1056_v32  ;;  %v1114_v10 = vadd.f32 %v1113_v3, %v1112_v59  ;;  %v1053_v0 = vadd.f32 %v1052_v35, %v1051_v33  ;;  %v1109_v50 = vadd.f32 %v1108_v20, %v1107_v49 }
 0x439   :  { %v1063_v36 = vsel %vm96_vm0, %v1011_v60, 0.0  ;;  %v1119_v58 = vsel %vm96_vm0, %v1019_v4, 0.0  ;;  %v1103_v9 = vrot.slane %v1102_v41, 1  ;;  %v1041_v46 = vadd.f32 %v1040_v1, %v1039_v12 }
 0x43a   :  { %v963_v6 = vpop.permute.xlu1 %962  ;;  %v1003_v48 = vpop.permute.xlu0 %1002  ;;  %v1059_v29 = vrot.slane %v1058_v37, 2  ;;  %v1115_v11 = vrot.slane %v1114_v10, 2  ;;  %v1064_v22 = vrot.slane %v1063_v36, 4  ;;  %v1120_v47 = vrot.slane %v1119_v58, 4 }
 0x43b   :  { %v1012_v13 = vmul.f32 %v963_v6, %v916_v40  ;;  %v1020_v26 = vmul.f32 %v1003_v48, %v924_v44  ;;  %v1054_v19 = vrot.slane %v1053_v0, 1  ;;  %v1110_v27 = vrot.slane %v1109_v50, 1 }
 0x43c   :  { %v1060_v39 = vadd.f32 %v1059_v29, %v1058_v37  ;;  %v1065_v14 = vadd.f32 %v1064_v22, %v1063_v36  ;;  %v1116_v38 = vadd.f32 %v1115_v11, %v1114_v10  ;;  %v1121_v15 = vadd.f32 %v1120_v47, %v1119_v58 }
 0x43d   :  { %v1070_v21 = vsel %vm96_vm0, %v1012_v13, 0.0  ;;  %v1126_v16 = vsel %vm96_vm0, %v1020_v26, 0.0  ;;  %v1097_v33 = vadd.f32 %v1096_v17, %v1095_v25  ;;  %v1048_v55 = vadd.f32 %v1047_v31, %v1046_v18 }
 0x43e   :  { %v1066_v7 = vrot.slane %v1065_v14, 2  ;;  %v1071_v24 = vrot.slane %v1070_v21, 4  ;;  %v1122_v23 = vrot.slane %v1121_v15, 2  ;;  %v1127_v8 = vrot.slane %v1126_v16, 4 }
 0x43f   :  { %v1061_v28 = vrot.slane %v1060_v39, 1  ;;  %v1117_v54 = vrot.slane %v1116_v38, 1  ;;  %v1104_v57 = vadd.f32 %v1103_v9, %v1102_v41  ;;  %v1055_v49 = vadd.f32 %v1054_v19, %v1053_v0 }
 0x440   :  { %v1067_v43 = vadd.f32 %v1066_v7, %v1065_v14  ;;  %v1072_v30 = vadd.f32 %v1071_v24, %v1070_v21  ;;  %v1123_v51 = vadd.f32 %v1122_v23, %v1121_v15  ;;  %v1128_v52 = vadd.f32 %v1127_v8, %v1126_v16 }
 0x441   :  { %v1156_v61 = vsel %vm499_vm1, %v1090_v5, %v1083_v2  ;;  %v1111_v62 = vadd.f32 %v1110_v27, %v1109_v50  ;;  %v1062_v63 = vadd.f32 %v1061_v28, %v1060_v39  ;;  %v1150_v44 = vsel %vm501_vm2, %v1041_v46, %v1821_v45 }
 0x442   :  { %v1068_v56 = vrot.slane %v1067_v43, 1  ;;  %v1073_v40 = vrot.slane %v1072_v30, 2  ;;  %v1124_v32 = vrot.slane %v1123_v51, 1  ;;  %v1129_v59 = vrot.slane %v1128_v52, 2 }
 0x443   :  { %v1118_v53 = vadd.f32 %v1117_v54, %v1116_v38  ;;  %v1157_v35 = vsel %vm501_vm2, %v1097_v33, %v1156_v61  ;;  %v1151_v60 = vsel %vm503_vm3, %v1048_v55, %v1150_v44 }
 0x444   :  { %v1074_v34 = vadd.f32 %v1073_v40, %v1072_v30  ;;  %v1069_v42 = vadd.f32 %v1068_v56, %v1067_v43  ;;  %v1130_v3 = vadd.f32 %v1129_v59, %v1128_v52  ;;  %v1125_v4 = vadd.f32 %v1124_v32, %v1123_v51 }
 0x445   :  { %v1158_v20 = vsel %vm503_vm3, %v1104_v57, %v1157_v35  ;;  %v1152_v37 = vsel %vm505_vm4, %v1055_v49, %v1151_v60 }
 0x446   :  { %v1075_v12 = vrot.slane %v1074_v34, 1  ;;  %v1131_v2 = vrot.slane %v1130_v3, 1  ;;  %v1159_v5 = vsel %vm505_vm4, %v1111_v62, %v1158_v20  ;;  %v1153_v45 = vsel %vm507_vm5, %v1062_v63, %v1152_v37 }
 0x447   :  { %v1160_v6 = vsel %vm507_vm5, %v1118_v53, %v1159_v5  ;;  %v1154_v25 = vsel %vm509_vm6, %v1069_v42, %v1153_v45 }
 0x448   :  { %v1076_v10 = vadd.f32 %v1075_v12, %v1074_v34  ;;  %v1132_v48 = vadd.f32 %v1131_v2, %v1130_v3  ;;  %v1161_v36 = vsel %vm509_vm6, %v1125_v4, %v1160_v6 }
 0x44a   :  { %v1155_v18 = vsel %vm511_vm7, %v1076_v10, %v1154_v25  ;;  %v1162_v58 = vsel %vm511_vm7, %v1132_v48, %v1161_v36 }
 0x44b   :  { %1165 = vst.msk [vmem:[#allocation2] sm:$0xff] %vm96_vm0, %v1155_v18  ;;  %1166 = vst.msk [vmem:[#allocation2 + $0x8] sm:$0xff] %vm96_vm0, %v1162_v58 }
 0x44c   :  { %1403 = shalt.err (!%p1400_p4)
}
 0x44d   :  { %s1404_s28 = scalar_lea.hbm %s1858_s3, 256 }
 0x44e   :  { %p1405_p5 = scmp.ne.s32.totalorder %s1858_s3, %s1404_s28  ;;  %p1408_p6 = scmp.lt.u32.totalorder %s1404_s28, %s1858_s3 }
 0x450   :  { %p1410_p7 = pnand %p1408_p6, %p1405_p5 }
 0x452   :  { %1413 = shalt.err (!%p1410_p7)
}
 0x453   :  { %s1418_s6 = smov 128   ;;  %s1419_s7 = smov 8  }
 0x454   :  { %1178 = dma.vmem_to_hbm [thread:$0]  %s1173_s24, 256, %s1858_s3, [#allocation3], %s1418_s6, %s1418_s6, %s1419_s7  }
 0x455   :  { %1414 = dma.done.wait [#allocation3], 256  }
 0x456   :  { %1415 = vsyncadd [#allocation3], 4294967040 }
 0x457   :  { %1182 = vsyncpa [#allocation3], 1 }

</bundles_post_ra>
